<compile_context>
chip_gen: v5e
topology: v5e:2x2
jax: 0.10.0
libtpu: 0.0.40
codegen_flags: <defaults>
</compile_context>

<pallas_src>
import jax
import jax.numpy as jnp
from jax.experimental import pallas as pl
from jax.experimental.pallas import tpu as pltpu


def _ensemble_kernel(theta_ref, obs_ref, w1t_ref, w1o_ref, b1_ref,
                     w2_ref, b2_ref, w3_ref, b3_ref, o_ref):
    """Single invocation: all K classifiers computed in one body.

    theta_ref : [B, Dt]            obs_ref : [B, Do]
    w1t_ref   : [Dt, K*H]          w1o_ref : [Do, K*H]      b1_ref : [1, K*H]
    w2_ref    : [K*H, K*H] (block-diagonal)                  b2_ref : [1, K*H]
    w3_ref    : [1, K*H]           b3_ref  : [K]  (SMEM scalars)
    o_ref     : [1, 1]   ensemble-mean probability
    """
    theta = theta_ref[...]
    obs = obs_ref[...]
    B = theta.shape[0]
    K = b3_ref.shape[0]
    H = w3_ref.shape[1] // K

    # Layer 1 (all K members at once, lane-packed to K*H):
    #   [B, Dt] @ [Dt, K*H]  +  [B, Do] @ [Do, K*H]  + b1  -> ReLU
    h1 = jnp.dot(theta, w1t_ref[...], preferred_element_type=jnp.float32)
    h1 = h1 + jnp.dot(obs, w1o_ref[...], preferred_element_type=jnp.float32)
    h1 = jnp.maximum(h1 + b1_ref[...], 0.0)                       # [B, K*H]

    # Layer 2: block-diagonal packed weights -> one lane-dense MXU pass.
    h2 = jnp.dot(h1, w2_ref[...], preferred_element_type=jnp.float32)
    h2 = jnp.maximum(h2 + b2_ref[...], 0.0)                       # [B, K*H]

    # Output head on VPU/XLU: per-member row-dot with W3, bias, sigmoid.
    prod = h2 * w3_ref[...]                                       # [B, K*H]
    total = jnp.zeros((1, 1), jnp.float32)
    for k in range(K):  # static unroll; K is small
        logit_k = jnp.sum(prod[:, k * H:(k + 1) * H], axis=-1, keepdims=True)
        prob_k = jax.nn.sigmoid(logit_k + b3_ref[k])              # [B, 1]
        total = total + jnp.sum(prob_k, axis=0, keepdims=True)    # [1, 1]

    # torch: cat(dim=0) -> [K*B, 1]; mean(dim=0) == sum / (K*B)
    o_ref[...] = total / jnp.float32(K * B)


def _pack_params(params, theta_dim):
    """One-time repack: stack K into the lane axis and build block-diag W2."""
    w1, b1, w2, b2, w3, b3 = params
    K, D, H = w1.shape

    w1p = jnp.transpose(w1, (1, 0, 2)).reshape(D, K * H)   # [D, K*H]
    w1t = w1p[:theta_dim, :]                               # rows matching thetas
    w1o = w1p[theta_dim:, :]                               # rows matching observations
    b1p = b1.reshape(1, K * H)

    w2p = jax.scipy.linalg.block_diag(*[w2[k] for k in range(K)])   # [K*H, K*H]
    b2p = b2.reshape(1, K * H)

    w3row = w3.reshape(1, K * H)                           # [1, K*H]
    b3row = b3.reshape(K).astype(jnp.float32)              # [K] scalars

    return w1t, w1o, b1p, w2p, b2p, w3row, b3row


def ensemble_forward(observations, thetas, params):
    """JAX wrapper reproducing ParameterizedClassifierEnsemble.forward."""
    observations = observations.astype(jnp.float32)
    thetas = thetas.astype(jnp.float32)
    w1t, w1o, b1p, w2p, b2p, w3row, b3row = _pack_params(params, thetas.shape[1])

    vmem = pltpu.MemorySpace.VMEM
    smem = pltpu.MemorySpace.SMEM

    out = pl.pallas_call(
        _ensemble_kernel,
        out_shape=jax.ShapeDtypeStruct((1, 1), jnp.float32),
        in_specs=[
            pl.BlockSpec(memory_space=vmem),   # thetas        [B, Dt]
            pl.BlockSpec(memory_space=vmem),   # observations  [B, Do]
            pl.BlockSpec(memory_space=vmem),   # W1 (theta rows)  [Dt, K*H]
            pl.BlockSpec(memory_space=vmem),   # W1 (obs rows)    [Do, K*H]
            pl.BlockSpec(memory_space=vmem),   # b1            [1, K*H]
            pl.BlockSpec(memory_space=vmem),   # W2 block-diag [K*H, K*H]
            pl.BlockSpec(memory_space=vmem),   # b2            [1, K*H]
            pl.BlockSpec(memory_space=vmem),   # W3 row        [1, K*H]
            pl.BlockSpec(memory_space=smem),   # b3 scalars    [K]
        ],
        out_specs=pl.BlockSpec(memory_space=vmem),
    )(thetas, observations, w1t, w1o, b1p, w2p, b2p, w3row, b3row)

    # torch: cat(dim=0) -> [K*B, 1]; mean(dim=0) -> shape [1]
    return out.reshape(-1)


def ensemble_forward_ref(observations, thetas, params):
    """Pure-JAX reference for correctness checking."""
    w1, b1, w2, b2, w3, b3 = params
    x = jnp.concatenate([thetas, observations], axis=1).astype(jnp.float32)
    outs = []
    for k in range(w1.shape[0]):
        h1 = jnp.maximum(x @ w1[k] + b1[k], 0.0)
        h2 = jnp.maximum(h1 @ w2[k] + b2[k], 0.0)
        outs.append(jax.nn.sigmoid(h2 @ w3[k] + b3[k]))
    return jnp.concatenate(outs, axis=0).mean(axis=0)


def init_params(key, num_classifiers, d_in, hidden):
    """Deterministic torch.nn.Linear-style init (uniform +/- 1/sqrt(fan_in))."""
    ks = jax.random.split(key, 6)

    def u(k, shape, fan_in):
        bound = 1.0 / jnp.sqrt(jnp.float32(fan_in))
        return jax.random.uniform(k, shape, jnp.float32, -bound, bound)

    w1 = u(ks[0], (num_classifiers, d_in, hidden), d_in)
    b1 = u(ks[1], (num_classifiers, 1, hidden), d_in)
    w2 = u(ks[2], (num_classifiers, hidden, hidden), hidden)
    b2 = u(ks[3], (num_classifiers, 1, hidden), hidden)
    w3 = u(ks[4], (num_classifiers, hidden, 1), hidden)
    b3 = u(ks[5], (num_classifiers, 1, 1), hidden)
    return (w1, b1, w2, b2, w3, b3)


if __name__ == "__main__":
    key = jax.random.PRNGKey(0)
    k_obs, k_theta, k_params = jax.random.split(key, 3)

    B = 8          # batch of observations
    OBS_DIM = 6    # observation feature dim
    THETA_DIM = 2  # parameter dim
    HIDDEN = 32    # MLP hidden width
    K = 3          # number of classifiers in the ensemble

    observations = jax.random.normal(k_obs, (B, OBS_DIM), jnp.float32)
    thetas = jax.random.normal(k_theta, (B, THETA_DIM), jnp.float32)
    params = init_params(k_params, K, OBS_DIM + THETA_DIM, HIDDEN)

    out = ensemble_forward(observations, thetas, params)
    out = jax.block_until_ready(out)

    ref = ensemble_forward_ref(observations, thetas, params)
    assert out.shape == (1,), out.shape
    assert jnp.allclose(out, ref, atol=1e-5, rtol=1e-5), (out, ref)

    print("KERNEL_OK")
</pallas_src>

<mosaic_0001>
module attributes {stable_mosaic.version = 11 : i64} {
  func.func @_ensemble_kernel(%arg0: memref<8x2xf32, #tpu.memory_space<vmem>>, %arg1: memref<8x6xf32, #tpu.memory_space<vmem>>, %arg2: memref<2x96xf32, #tpu.memory_space<vmem>>, %arg3: memref<6x96xf32, #tpu.memory_space<vmem>>, %arg4: memref<1x96xf32, #tpu.memory_space<vmem>>, %arg5: memref<96x96xf32, #tpu.memory_space<vmem>>, %arg6: memref<1x96xf32, #tpu.memory_space<vmem>>, %arg7: memref<1x96xf32, #tpu.memory_space<vmem>>, %arg8: memref<3xf32, #tpu.memory_space<smem>>, %arg9: memref<1x1xf32, #tpu.memory_space<vmem>>) attributes {dimension_semantics = [], scalar_prefetch = 0 : i64, scratch_operands = 0 : i64, tpu.core_type = #tpu.core_type<tc>} {
    %c0 = arith.constant 0 : index
    %c0_0 = arith.constant 0 : index
    %0 = vector.load %arg0[%c0, %c0_0] : memref<8x2xf32, #tpu.memory_space<vmem>>, vector<8x2xf32>
    %c0_1 = arith.constant 0 : index
    %c0_2 = arith.constant 0 : index
    %1 = vector.load %arg1[%c0_1, %c0_2] : memref<8x6xf32, #tpu.memory_space<vmem>>, vector<8x6xf32>
    %c0_3 = arith.constant 0 : index
    %c0_4 = arith.constant 0 : index
    %2 = vector.load %arg2[%c0_3, %c0_4] : memref<2x96xf32, #tpu.memory_space<vmem>>, vector<2x96xf32>
    %cst = arith.constant dense<0.000000e+00> : vector<8x96xf32>
    %3 = tpu.matmul %0, %2, %cst {dimension_numbers = #tpu.dot_dimension_numbers<[1], [0], [0], [1], [0, 0, 1, 1], [], []>} : vector<8x2xf32>, vector<2x96xf32>, vector<8x96xf32> -> vector<8x96xf32>
    %c0_5 = arith.constant 0 : index
    %c0_6 = arith.constant 0 : index
    %4 = vector.load %arg3[%c0_5, %c0_6] : memref<6x96xf32, #tpu.memory_space<vmem>>, vector<6x96xf32>
    %cst_7 = arith.constant dense<0.000000e+00> : vector<8x96xf32>
    %5 = tpu.matmul %1, %4, %cst_7 {dimension_numbers = #tpu.dot_dimension_numbers<[1], [0], [0], [1], [0, 0, 1, 1], [], []>} : vector<8x6xf32>, vector<6x96xf32>, vector<8x96xf32> -> vector<8x96xf32>
    %6 = arith.addf %3, %5 : vector<8x96xf32>
    %c0_8 = arith.constant 0 : index
    %c0_9 = arith.constant 0 : index
    %7 = vector.load %arg4[%c0_8, %c0_9] : memref<1x96xf32, #tpu.memory_space<vmem>>, vector<1x96xf32>
    %8 = vector.broadcast %7 : vector<1x96xf32> to vector<8x96xf32>
    %9 = arith.addf %6, %8 : vector<8x96xf32>
    %cst_10 = arith.constant 0.000000e+00 : f32
    %10 = vector.broadcast %cst_10 : f32 to vector<8x96xf32>
    %11 = arith.maximumf %9, %10 : vector<8x96xf32>
    %c0_11 = arith.constant 0 : index
    %c0_12 = arith.constant 0 : index
    %12 = vector.load %arg5[%c0_11, %c0_12] : memref<96x96xf32, #tpu.memory_space<vmem>>, vector<96x96xf32>
    %cst_13 = arith.constant dense<0.000000e+00> : vector<8x96xf32>
    %13 = tpu.matmul %11, %12, %cst_13 {dimension_numbers = #tpu.dot_dimension_numbers<[1], [0], [0], [1], [0, 0, 1, 1], [], []>} : vector<8x96xf32>, vector<96x96xf32>, vector<8x96xf32> -> vector<8x96xf32>
    %c0_14 = arith.constant 0 : index
    %c0_15 = arith.constant 0 : index
    %14 = vector.load %arg6[%c0_14, %c0_15] : memref<1x96xf32, #tpu.memory_space<vmem>>, vector<1x96xf32>
    %15 = vector.broadcast %14 : vector<1x96xf32> to vector<8x96xf32>
    %16 = arith.addf %13, %15 : vector<8x96xf32>
    %cst_16 = arith.constant 0.000000e+00 : f32
    %17 = vector.broadcast %cst_16 : f32 to vector<8x96xf32>
    %18 = arith.maximumf %16, %17 : vector<8x96xf32>
    %c0_17 = arith.constant 0 : index
    %c0_18 = arith.constant 0 : index
    %19 = vector.load %arg7[%c0_17, %c0_18] : memref<1x96xf32, #tpu.memory_space<vmem>>, vector<1x96xf32>
    %20 = vector.broadcast %19 : vector<1x96xf32> to vector<8x96xf32>
    %21 = arith.mulf %18, %20 : vector<8x96xf32>
    %cst_19 = arith.constant 0.000000e+00 : f32
    %22 = vector.broadcast %cst_19 : f32 to vector<1x1xf32>
    %23 = vector.extract_strided_slice %21 {offsets = [0, 0], sizes = [8, 32], strides = [1, 1]} : vector<8x96xf32> to vector<8x32xf32>
    %cst_20 = arith.constant dense<0.000000e+00> : vector<8xf32>
    %24 = vector.multi_reduction <add>, %23, %cst_20 [1] : vector<8x32xf32> to vector<8xf32>
    %25 = vector.shape_cast %24 : vector<8xf32> to vector<8x1xf32>
    %c0_21 = arith.constant 0 : index
    %26 = memref.load %arg8[%c0_21] : memref<3xf32, #tpu.memory_space<smem>>
    %27 = vector.broadcast %26 : f32 to vector<8x1xf32>
    %28 = arith.addf %25, %27 : vector<8x1xf32>
    %29 = arith.negf %28 : vector<8x1xf32>
    %30 = math.exp %29 : vector<8x1xf32>
    %cst_22 = arith.constant 1.000000e+00 : f32
    %31 = vector.broadcast %cst_22 : f32 to vector<8x1xf32>
    %32 = arith.addf %31, %30 : vector<8x1xf32>
    %33 = arith.divf %31, %32 : vector<8x1xf32>
    %cst_23 = arith.constant dense<0.000000e+00> : vector<1xf32>
    %34 = vector.multi_reduction <add>, %33, %cst_23 [0] : vector<8x1xf32> to vector<1xf32>
    %35 = vector.shape_cast %34 : vector<1xf32> to vector<1x1xf32>
    %36 = arith.addf %22, %35 : vector<1x1xf32>
    %37 = vector.extract_strided_slice %21 {offsets = [0, 32], sizes = [8, 32], strides = [1, 1]} : vector<8x96xf32> to vector<8x32xf32>
    %cst_24 = arith.constant dense<0.000000e+00> : vector<8xf32>
    %38 = vector.multi_reduction <add>, %37, %cst_24 [1] : vector<8x32xf32> to vector<8xf32>
    %39 = vector.shape_cast %38 : vector<8xf32> to vector<8x1xf32>
    %c1 = arith.constant 1 : index
    %40 = memref.load %arg8[%c1] : memref<3xf32, #tpu.memory_space<smem>>
    %41 = vector.broadcast %40 : f32 to vector<8x1xf32>
    %42 = arith.addf %39, %41 : vector<8x1xf32>
    %43 = arith.negf %42 : vector<8x1xf32>
    %44 = math.exp %43 : vector<8x1xf32>
    %cst_25 = arith.constant 1.000000e+00 : f32
    %45 = vector.broadcast %cst_25 : f32 to vector<8x1xf32>
    %46 = arith.addf %45, %44 : vector<8x1xf32>
    %47 = arith.divf %45, %46 : vector<8x1xf32>
    %cst_26 = arith.constant dense<0.000000e+00> : vector<1xf32>
    %48 = vector.multi_reduction <add>, %47, %cst_26 [0] : vector<8x1xf32> to vector<1xf32>
    %49 = vector.shape_cast %48 : vector<1xf32> to vector<1x1xf32>
    %50 = arith.addf %36, %49 : vector<1x1xf32>
    %51 = vector.extract_strided_slice %21 {offsets = [0, 64], sizes = [8, 32], strides = [1, 1]} : vector<8x96xf32> to vector<8x32xf32>
    %cst_27 = arith.constant dense<0.000000e+00> : vector<8xf32>
    %52 = vector.multi_reduction <add>, %51, %cst_27 [1] : vector<8x32xf32> to vector<8xf32>
    %53 = vector.shape_cast %52 : vector<8xf32> to vector<8x1xf32>
    %c2 = arith.constant 2 : index
    %54 = memref.load %arg8[%c2] : memref<3xf32, #tpu.memory_space<smem>>
    %55 = vector.broadcast %54 : f32 to vector<8x1xf32>
    %56 = arith.addf %53, %55 : vector<8x1xf32>
    %57 = arith.negf %56 : vector<8x1xf32>
    %58 = math.exp %57 : vector<8x1xf32>
    %cst_28 = arith.constant 1.000000e+00 : f32
    %59 = vector.broadcast %cst_28 : f32 to vector<8x1xf32>
    %60 = arith.addf %59, %58 : vector<8x1xf32>
    %61 = arith.divf %59, %60 : vector<8x1xf32>
    %cst_29 = arith.constant dense<0.000000e+00> : vector<1xf32>
    %62 = vector.multi_reduction <add>, %61, %cst_29 [0] : vector<8x1xf32> to vector<1xf32>
    %63 = vector.shape_cast %62 : vector<1xf32> to vector<1x1xf32>
    %64 = arith.addf %50, %63 : vector<1x1xf32>
    %cst_30 = arith.constant 2.400000e+01 : f32
    %65 = vector.broadcast %cst_30 : f32 to vector<1x1xf32>
    %66 = arith.divf %64, %65 : vector<1x1xf32>
    %c0_31 = arith.constant 0 : index
    %c0_32 = arith.constant 0 : index
    %67 = vector.load %arg9[%c0_31, %c0_32] : memref<1x1xf32, #tpu.memory_space<vmem>>, vector<1x1xf32>
    tpu.vector_store %arg9[%c0_31, %c0_32], %66 {strides = array<i32>} : memref<1x1xf32, #tpu.memory_space<vmem>>, vector<1x1xf32>,
    return
  }
}

</mosaic_0001>

<bundles_post_ra>
// kernel: tpu_custom_call.1
= control target key start
LH: loop header
LB: loop body
LE: loop exit
PB: predicated region body
PF: predicated region fallthrough
CT: control target
= control target key end

     0   :  { %14 = vsyncpa [#allocation3], 0  ;;  %s538_s0 = inlined_call_operand.vmem [shape: f32[8,2], index: 0, kind: input, shape index: {}]   ;;  %s539_s1 = inlined_call_operand.vmem [shape: f32[8,6], index: 1, kind: input, shape index: {}]   ;;  %s540_s2 = inlined_call_operand.vmem [shape: f32[2,96], index: 2, kind: input, shape index: {}]   ;;  %s541_s3 = inlined_call_operand.hbm [shape: f32[6,96], index: 3, kind: input, shape index: {}]   ;;  %s542_s4 = inlined_call_operand.vmem [shape: f32[1,96], index: 4, kind: input, shape index: {}]   ;;  %s543_s5 = inlined_call_operand.hbm [shape: f32[96,96], index: 5, kind: input, shape index: {}]   ;;  %s544_s6 = inlined_call_operand.vmem [shape: f32[1,96], index: 6, kind: input, shape index: {}]   ;;  %s545_s7 = inlined_call_operand.vmem [shape: f32[1,96], index: 7, kind: input, shape index: {}]   ;;  %s546_s8 = inlined_call_operand.vmem [shape: f32[3], index: 8, kind: input, shape index: {}]   ;;  %s547_s9 = inlined_call_operand.hbm [shape: f32[1,1], index: 9, kind: output, shape index: {}]  }
   0x1   :  { %15 = vsyncpa [#allocation7], 0 }
   0x2   :  { %16 = vsyncpa [#allocation5], 0 }
   0x3   :  { %17 = vsyncpa [#allocation4], 0  ;;  %s29_s11 = sshll.u32 %s541_s3, 4  ;;  %s449_s12 = smov [#allocation2]   ;;  %s30_s11 = int_to_ptr.hbm [resolvable:$true] %s29_s11 }
   0x4   :  { %s31_s13 = sshll.u32 %s449_s12, 4  ;;  %s41_s16 = sshll.u32 %s543_s5, 4  ;;  %s32_s13 = int_to_ptr.vmem [resolvable:$true] %s31_s13  ;;  %s42_s16 = int_to_ptr.hbm [resolvable:$true] %s41_s16 }
   0x5   :  { %34 = dma.hbm_to_vmem [thread:$0]  %s30_s11, 128, %s32_s13, [#allocation3]  }
   0x6   :  { %s450_s17 = smov [#allocation6]   ;;  %s451_s19 = smov 128  }
   0x7   :  { %s43_s18 = sshll.u32 %s450_s17, 4  ;;  %s452_s20 = smov 8   ;;  %s44_s18 = int_to_ptr.vmem [resolvable:$true] %s43_s18 }
   0x8   :  { %49 = dma.hbm_to_vmem [thread:$0]  %s42_s16, 1536, %s44_s18, [#allocation7], %s451_s19, %s451_s19, %s452_s20  }
   0x9   :  { %s59_s3 = sshll.u32 %s546_s8, 4  ;;  %s453_s23 = smov [#allocation8]   ;;  %s60_s3 = int_to_ptr.vmem [resolvable:$true] %s59_s3 }
   0xa   :  { %62 = dma.vmem_to_smem %s60_s3, 16, %s453_s23, [#allocation5]  }
   0xb   :  { %441 = dma.done.wait [#allocation3], 128  }
   0xc   :  { %442 = vsyncadd [#allocation3], 4294967168 }
   0xd   :  { %443 = dma.done.wait [#allocation7], 1536  }
   0xe   :  { %444 = vsyncadd [#allocation7], 4294965760 }
   0xf   :  { %445 = dma.done.wait [#allocation5], 16  }
  0x10   :  { %446 = vsyncadd [#allocation5], 4294967280 }
  0x11   :  { %75 = sfence }
  0x12   :  { %v79_v0 = vld [vmem:[#allocation2] sm:$0x3f]  ;;  %vm84_vm0 = vcmask 1045504   ;;  %vm112_vm1 = vcmask 1041408   ;;  %vm80_vm2 = vcmask 48128   ;;  %vm108_vm3 = vcmask 15360  }
  0x13   :  { %v78_v1 = vld [vmem:[%s540_s2] sm:$0x3]  ;;  %321 = vmatpush.msk.msra.mxu0 %vm84_vm0, %v79_v0  ;;  %v152_v5 = vld [vmem:[#allocation6 + $0x50] sm:$0xff]  ;;  %v151_v6 = vld [vmem:[#allocation6 + $0x48] sm:$0xff]  ;;  %vm158_vm4 = vcmask 785408   ;;  %vm188_vm5 = vcmask 261120  }
  0x14   :  { %323 = vmatpush.msk.msra.mxu1 %vm112_vm1, %v78_v1  ;;  %v77_v2 = vld [vmem:[%s539_s1] sm:$0xff]  ;;  %v150_v7 = vld [vmem:[#allocation6 + $0x40] sm:$0xff]  ;;  %v148_v9 = vld [vmem:[#allocation6 + $0x30] sm:$0xff]  ;;  %s455_s10 = smov 64   ;;  %s329_s11 = sld [smem:[#allocation8 + $0x2]] }
  0x15   :  { %v76_v3 = vld [vmem:[%s538_s0] sm:$0xff]  ;;  %322 = vmatmul.msk.f32.vlgmr.msra.gmra.mxu0 %vm80_vm2, %v77_v2  ;;  %v147_v10 = vld [vmem:[#allocation6 + $0x28] sm:$0xff]  ;;  %v146_v11 = vld [vmem:[#allocation6 + $0x20] sm:$0xff]  ;;  %s457_s12 = smov [#allocation9]   ;;  %s309_s16 = sshll.u32 %s547_s9, 4  ;;  %s310_s16 = int_to_ptr.hbm [resolvable:$true] %s309_s16 }
  0x16   :  { %v153_v4 = vld [vmem:[#allocation6 + $0x58] sm:$0xff]  ;;  %324 = vmatmul.msk.f32.vlgmr.msra.gmra.mxu1 %vm108_vm3, %v76_v3  ;;  %v144_v13 = vld [vmem:[#allocation6 + $0x10] sm:$0xff]  ;;  %v143_v14 = vld [vmem:[#allocation6 + $0x8] sm:$0xff]  ;;  %v456_v3 = vmov 24.0   ;;  %s307_s13 = sshll.u32 %s457_s12, 4  ;;  %vm300_vm3 = vcmask 0   ;;  %s308_s13 = int_to_ptr.vmem [resolvable:$true] %s307_s13 }
  0x17   :  { %166 = vmatpush.msra.mxu2 %v153_v4  ;;  %v149_v8 = vld [vmem:[#allocation6 + $0x38] sm:$0xff]  ;;  %v142_v15 = vld [vmem:[#allocation6] sm:$0xff] }
  0x18   :  { %v145_v12 = vld [vmem:[#allocation6 + $0x18] sm:$0xff] }
  0x19   :  { %167 = vmatpush.msra.mxu2 %v152_v5  ;;  %v340_v16 = vld [vmem:[%s542_s4] ss:$0 sm:$0xff]  ;;  %s454_s4 = smov 96  }
  0x1a   :  { %v341_v22 = vld [vmem:[%s544_s6] ss:$0 sm:$0xff]  ;;  %s192_s6 = sld [smem:[#allocation8]]  ;;  %v264_v45 = vstv %s329_s11 }
  0x1b   :  { %168 = vmatpush.msra.mxu2 %v151_v6  ;;  %v342_v25 = vld [vmem:[%s545_s7] ss:$0 sm:$0xff]  ;;  %s327_s7 = sld [smem:[#allocation8 + $0x1]] }
  0x1d   :  { %169 = vmatpush.msra.mxu2 %v150_v7 }
  0x1f   :  { %170 = vmatpush.msra.mxu2 %v149_v8 }
  0x20   :  { %v193_v33 = vstv %s192_s6 }
  0x21   :  { %171 = vmatpush.msra.mxu2 %v148_v9  ;;  %v229_v39 = vstv %s327_s7 }
  0x23   :  { %172 = vmatpush.msra.mxu2 %v147_v10 }
  0x25   :  { %173 = vmatpush.msra.mxu2 %v146_v11 }
  0x27   :  { %174 = vmatpush.msra.mxu2 %v145_v12 }
  0x29   :  { %175 = vmatpush.msra.mxu2 %v144_v13 }
  0x2b   :  { %176 = vmatpush.msra.mxu2 %v143_v14 }
  0x2d   :  { %177 = vmatpush.msra.mxu2 %v142_v15 }
  0x92   :  { %v105_v17 = vpop.f32.mrf.mxu0 }
  0x93   :  { %v133_v18 = vpop.f32.mrf.mxu1 }
  0x94   :  { %v134_v19 = vadd.f32 %v133_v18, %v105_v17 }
  0x96   :  { %v140_v20 = vadd.f32 %v340_v16, %v134_v19 }
  0x98   :  { %v141_v21 = vmax.f32 %v140_v20, 0.0 }
  0x9a   :  { %325 = vmatmul.msk.f32.vlgmr.msra.gmra.mxu2 %vm158_vm4, %v141_v21 }
 0x11d   :  { %v179_v23 = vpop.f32.mrf.mxu2 }
 0x11e   :  { %v180_v24 = vadd.f32 %v341_v22, %v179_v23 }
 0x120   :  { %v182_v26 = vmax.f32 %v180_v24, 0.0 }
 0x122   :  { %v187_v27 = vmul.f32 %v342_v25, %v182_v26 }
 0x124   :  { %222 = vrot.lane.b32.xlu0 %v187_v27, %s454_s4  ;;  %v189_v28 = vsel %vm188_vm5, %v187_v27, 0.0 }
 0x125   :  { %190 = vadd.xlane.f32.xlu1 %v189_v28 }
 0x12c   :  { %257 = vrot.lane.b32.xlu0 %v187_v27, %s455_s10 }
 0x196   :  { %v223_v29 = vpop.permute.xlu0 %222 }
 0x197   :  { %v225_v30 = vsel %vm188_vm5, %v223_v29, 0.0 }
 0x198   :  { %226 = vadd.xlane.f32.xlu1 %v225_v30  ;;  %v191_v34 = vpop.xlane.xlu1 %190 }
 0x199   :  { %v194_v35 = vadd.f32 %v193_v33, %v191_v34 }
 0x19b   :  { %v326_v36 = vmul.f32 -1.442695, %v194_v35 }
 0x19d   :  { %343 = vpow2.f32 %v326_v36 }
 0x19e   :  { %v258_v31 = vpop.permute.xlu0 %257 }
 0x19f   :  { %v260_v32 = vsel %vm188_vm5, %v258_v31, 0.0 }
 0x1a0   :  { %261 = vadd.xlane.f32.xlu2 %v260_v32 }
 0x1a3   :  { %v344_v37 = vpop.eup %343 }
 0x1a4   :  { %v198_v38 = vadd.f32 1.0, %v344_v37 }
 0x1a6   :  { %345 = vrcp.f32 %v198_v38  ;;  %v210_v54 = vand.u32 2147483648, %v198_v38  ;;  %vm204_vm7 = vweird.f32 %v198_v38  ;;  %v208_v56 = vand.u32 2147483647, %v198_v38 }
 0x1a8   :  { %v211_v61 = vor.u32 1.1754944e-38, %v210_v54  ;;  %vm209_vm9 = vcmp.eq.f32.partialorder %v208_v56, 8.507059e+37 }
 0x1ac   :  { %v346_v42 = vpop.eup %345 }
 0x1ad   :  { %v200_v44 = vmul.f32 %v346_v42, %v198_v38  ;;  %vm205_vm6 = vweird.f32 %v346_v42 }
 0x1ae   :  { %vm206_vm8 = vmor %vm204_vm7, %vm205_vm6 }
 0x1af   :  { %v201_v47 = vsub.f32 1.0, %v200_v44 }
 0x1b1   :  { %v202_v52 = vmul.f32 %v346_v42, %v201_v47 }
 0x1b3   :  { %v203_v53 = vadd.f32 %v346_v42, %v202_v52 }
 0x1b5   :  { %v207_v60 = vsel %vm206_vm8, %v346_v42, %v203_v53 }
 0x1b6   :  { %v212_v0 = vsel %vm209_vm9, %v211_v61, %v207_v60 }
 0x1b7   :  { %v214_v5 = vrot.slane %v212_v0, 4 }
 0x1b9   :  { %v215_v13 = vadd.f32 %v214_v5, %v212_v0 }
 0x1bb   :  { %v216_v20 = vrot.slane %v215_v13, 2 }
 0x1bd   :  { %v217_v28 = vadd.f32 %v216_v20, %v215_v13 }
 0x1bf   :  { %v218_v33 = vrot.slane %v217_v28, 1 }
 0x1c1   :  { %v219_v38 = vadd.f32 %v218_v33, %v217_v28 }
 0x20b   :  { %v227_v40 = vpop.xlane.xlu1 %226 }
 0x20c   :  { %v230_v41 = vadd.f32 %v229_v39, %v227_v40 }
 0x20e   :  { %v328_v43 = vmul.f32 -1.442695, %v230_v41 }
 0x210   :  { %347 = vpow2.f32 %v328_v43 }
 0x213   :  { %v262_v46 = vpop.xlane.xlu2 %261 }
 0x214   :  { %v265_v48 = vadd.f32 %v264_v45, %v262_v46 }
 0x216   :  { %v348_v49 = vpop.eup %347  ;;  %v330_v50 = vmul.f32 -1.442695, %v265_v48 }
 0x217   :  { %v234_v51 = vadd.f32 1.0, %v348_v49 }
 0x218   :  { %349 = vpow2.f32 %v330_v50 }
 0x219   :  { %351 = vrcp.f32 %v234_v51  ;;  %v246_v63 = vand.u32 2147483648, %v234_v51  ;;  %v244_v2 = vand.u32 2147483647, %v234_v51  ;;  %vm240_vm11 = vweird.f32 %v234_v51 }
 0x21b   :  { %v247_v7 = vor.u32 1.1754944e-38, %v246_v63  ;;  %vm245_vm13 = vcmp.eq.f32.partialorder %v244_v2, 8.507059e+37 }
 0x21e   :  { %v350_v55 = vpop.eup %349 }
 0x21f   :  { %v352_v57 = vpop.eup %351  ;;  %v269_v58 = vadd.f32 1.0, %v350_v55 }
 0x220   :  { %v236_v59 = vmul.f32 %v352_v57, %v234_v51  ;;  %vm241_vm10 = vweird.f32 %v352_v57 }
 0x221   :  { %353 = vrcp.f32 %v269_v58  ;;  %vm242_vm12 = vmor %vm240_vm11, %vm241_vm10  ;;  %v281_v15 = vand.u32 2147483648, %v269_v58  ;;  %v279_v18 = vand.u32 2147483647, %v269_v58  ;;  %vm275_vm15 = vweird.f32 %v269_v58 }
 0x222   :  { %v237_v62 = vsub.f32 1.0, %v236_v59  ;;  %355 = vrcp.f32 %v456_v3 }
 0x223   :  { %v282_v23 = vor.u32 1.1754944e-38, %v281_v15  ;;  %vm280_vm1 = vcmp.eq.f32.partialorder %v279_v18, 8.507059e+37 }
 0x224   :  { %v238_v1 = vmul.f32 %v352_v57, %v237_v62 }
 0x226   :  { %v239_v4 = vadd.f32 %v352_v57, %v238_v1 }
 0x227   :  { %v354_v6 = vpop.eup %353 }
 0x228   :  { %v271_v8 = vmul.f32 %v354_v6, %v269_v58  ;;  %v243_v9 = vsel %vm242_vm12, %v352_v57, %v239_v4  ;;  %v356_v11 = vpop.eup %355  ;;  %vm276_vm14 = vweird.f32 %v354_v6 }
 0x229   :  { %v248_v10 = vsel %vm245_vm13, %v247_v7, %v243_v9  ;;  %v293_v19 = vmul.f32 24.0, %v356_v11  ;;  %vm277_vm0 = vmor %vm275_vm15, %vm276_vm14  ;;  %vm297_vm2 = vweird.f32 %v356_v11 }
 0x22a   :  { %v272_v12 = vsub.f32 1.0, %v271_v8  ;;  %v250_v14 = vrot.slane %v248_v10, 4 }
 0x22b   :  { %v294_v27 = vsub.f32 1.0, %v293_v19 }
 0x22c   :  { %v273_v16 = vmul.f32 %v354_v6, %v272_v12  ;;  %v251_v17 = vadd.f32 %v250_v14, %v248_v10 }
 0x22d   :  { %v295_v32 = vmul.f32 %v356_v11, %v294_v27 }
 0x22e   :  { %v252_v21 = vrot.slane %v251_v17, 2  ;;  %v274_v22 = vadd.f32 %v354_v6, %v273_v16 }
 0x22f   :  { %v296_v37 = vadd.f32 %v356_v11, %v295_v32 }
 0x230   :  { %v253_v24 = vadd.f32 %v252_v21, %v251_v17  ;;  %v278_v25 = vsel %vm277_vm0, %v354_v6, %v274_v22 }
 0x231   :  { %v283_v26 = vsel %vm280_vm1, %v282_v23, %v278_v25  ;;  %v298_v42 = vsel %vm297_vm2, %v356_v11, %v296_v37 }
 0x232   :  { %v285_v29 = vrot.slane %v283_v26, 4  ;;  %v254_v30 = vrot.slane %v253_v24, 1 }
 0x234   :  { %v286_v31 = vadd.f32 %v285_v29, %v283_v26  ;;  %v255_v35 = vadd.f32 %v254_v30, %v253_v24 }
 0x236   :  { %v287_v34 = vrot.slane %v286_v31, 2  ;;  %v256_v40 = vadd.f32 %v255_v35, %v219_v38 }
 0x238   :  { %v288_v36 = vadd.f32 %v287_v34, %v286_v31 }
 0x23a   :  { %v289_v39 = vrot.slane %v288_v36, 1 }
 0x23c   :  { %v290_v41 = vadd.f32 %v289_v39, %v288_v36 }
 0x23e   :  { %v291_v43 = vadd.f32 %v290_v41, %v256_v40 }
 0x240   :  { %v299_v44 = vmul.f32 %v298_v42, %v291_v43 }
 0x242   :  { %301 = vst.msk [vmem:[#allocation9] sm:$0x1] %vm300_vm3, %v299_v44 }
 0x243   :  { %312 = dma.vmem_to_hbm [thread:$0]  %s308_s13, 16, %s310_s16, [#allocation4]  }
 0x244   :  { %447 = dma.done.wait [#allocation4], 16  }
 0x245   :  { %448 = vsyncadd [#allocation4], 4294967280 }
 0x246   :  { %317 = vsyncpa [#allocation3], 1 }
 0x247   :  { %318 = vsyncpa [#allocation7], 1 }
 0x248   :  { %319 = vsyncpa [#allocation4], 1 }
 0x249   :  { %320 = vsyncpa [#allocation5], 1 }

</bundles_post_ra>
